<compile_context>
chip_gen: v7x
topology: tpu7x:2x2x1
jax: 0.10.0
libtpu: 0.0.40
codegen_flags: <defaults>
</compile_context>

<pallas_src>
import jax
import jax.numpy as jnp
from jax.experimental import pallas as pl
from jax.experimental.pallas import tpu as pltpu

_LANES = 128
_SUB = 8
_SUB_ROWS = 512               # inner fori_loop sub-tile (256 KiB f32 per input)
_MAX_BLOCK_ROWS = 8192        # (8192,128) f32 = 4 MiB per input per pipeline buffer
_VMEM_LIMIT = 40 * 1024 * 1024  # > 16 MiB input double-buffers; < v7x 64 MiB physical


def _cdiv(a, b):
    return (a + b - 1) // b


def _round_up(a, b):
    return _cdiv(a, b) * b


def _num_tensorcores():
    """Best-effort TensorCore-per-device count (2 on megacore chips, 1 on v5e/v6e)."""
    # TODO(synk): switch to an explicit core-count query if TpuInfo exposes one.
    try:
        kind = jax.devices()[0].device_kind.lower()
    except Exception:
        return 2
    if ("v5 lite" in kind or "v5e" in kind or "v6 lite" in kind or "v6e" in kind):
        return 1
    return 2


def _make_loss_sums_kernel(block_rows, sub_rows, steps_per_chunk, rows, needs_mask):
    """Accumulates sum((p-y)^2), sum(smooth_l1(p-y)), sum(y), sum(y^2) as four
    (8,128) f32 vector partials in the (revisited-across-k) output block."""
    n_sub = block_rows // sub_rows

    def subtile_sums(p, y, valid):
        p = p.astype(jnp.float32)
        y = y.astype(jnp.float32)
        d = p - y
        if valid is not None:
            d = jnp.where(valid, d, 0.0)
            y = jnp.where(valid, y, 0.0)
        sq = d * d
        ad = jnp.abs(d)
        # SmoothL1Loss with default beta=1.0: 0.5*d^2 if |d|<1 else |d|-0.5
        sl1 = jnp.where(ad < 1.0, 0.5 * sq, ad - 0.5)
        ysq = y * y

        def fold(x):
            # (sub_rows,128) -> (8,128): leading-axis sum = pure VPU vector adds,
            # no cross-lane (XLU) work inside the streaming loop.
            # TODO(synk): on v7x (close to VALU-bound) these folds could move to
            # the otherwise-idle MXU via a ones-matrix matmul.
            return x.reshape(sub_rows // _SUB, _SUB, _LANES).sum(axis=0)

        return fold(sq), fold(sl1), fold(y), fold(ysq)

    def kernel(p_ref, y_ref, out_ref):
        k = pl.program_id(1)

        @pl.when(k == 0)
        def _():
            out_ref[...] = jnp.zeros_like(out_ref)

        def run(mask_fn):
            def body(t, acc):
                start = pl.multiple_of(t * sub_rows, sub_rows)
                p = p_ref[pl.ds(start, sub_rows), :]
                y = y_ref[pl.ds(start, sub_rows), :]
                valid = None if mask_fn is None else mask_fn(t)
                s0, s1, s2, s3 = subtile_sums(p, y, valid)
                return (acc[0] + s0, acc[1] + s1, acc[2] + s2, acc[3] + s3)

            zero = jnp.zeros((_SUB, _LANES), jnp.float32)
            acc = jax.lax.fori_loop(0, n_sub, body, (zero, zero, zero, zero),
                                    unroll=min(2, n_sub))
            out_ref[0] += acc[0]
            out_ref[1] += acc[1]
            out_ref[2] += acc[2]
            out_ref[3] += acc[3]

        if not needs_mask:
            run(None)
        else:
            # Logical (unclamped) block index; duplicated clamped blocks and the
            # ragged tail are zero-masked; steady-state blocks skip the mask cost.
            lb = pl.program_id(0) * steps_per_chunk + k
            limit = rows - lb * block_rows  # scalar: #valid rows in this block

            @pl.when(limit >= block_rows)
            def _():
                run(None)

            @pl.when(limit < block_rows)
            def _():
                rid = jax.lax.broadcasted_iota(jnp.int32, (sub_rows, _LANES), 0)
                run(lambda t: rid < (limit - t * sub_rows))

    return kernel


def _reduce_sums(pred, y):
    n = pred.size
    p = pred.reshape(-1)
    yf = y.reshape(-1)

    # Zero-copy path when n % 128 == 0 (the common case). Otherwise pad the lane
    # dim; zero padding is exact-safe (d=0 -> sq=sl1=0; y=0 -> 0 to sum(y),sum(y^2)).
    # TODO(synk): replace this rare pad copy with an in-kernel flat-element-id mask.
    if n % _LANES != 0:
        pad = _LANES - n % _LANES
        p = jnp.pad(p, (0, pad))
        yf = jnp.pad(yf, (0, pad))

    rows = p.size // _LANES
    p = p.reshape(rows, _LANES)
    yf = yf.reshape(rows, _LANES)

    sub_rows = min(_SUB_ROWS, _round_up(rows, _SUB))
    block_rows = min(_MAX_BLOCK_ROWS, _round_up(rows, sub_rows))
    n_blocks = _cdiv(rows, block_rows)

    # Outer "parallel" chunk axis only when the chip actually has 2 TensorCores;
    # on single-TC v5e/v6e it would just waste a duplicated, fully-masked block.
    num_chunks = 2 if (_num_tensorcores() >= 2 and n_blocks >= 2) else 1
    steps_per_chunk = _cdiv(n_blocks, num_chunks)
    needs_mask = (n_blocks * block_rows != rows) or (
        num_chunks * steps_per_chunk != n_blocks)

    last_block = n_blocks - 1

    def in_map(c, k):
        # Clamp so no DMA is ever issued for a fully out-of-bounds block; any
        # duplicated/partial block is zero-masked in-kernel.
        return (jnp.minimum(c * steps_per_chunk + k, last_block), 0)

    kernel = _make_loss_sums_kernel(block_rows, sub_rows, steps_per_chunk, rows,
                                    needs_mask)

    partials = pl.pallas_call(
        kernel,
        out_shape=jax.ShapeDtypeStruct((num_chunks, 4, _SUB, _LANES), jnp.float32),
        grid_spec=pltpu.PrefetchScalarGridSpec(
            num_scalar_prefetch=0,
            grid=(num_chunks, steps_per_chunk),
            in_specs=[
                pl.BlockSpec((block_rows, _LANES), in_map),
                pl.BlockSpec((block_rows, _LANES), in_map),
            ],
            out_specs=pl.BlockSpec((None, 4, _SUB, _LANES),
                                   lambda c, k: (c, 0, 0, 0)),
        ),
        compiler_params=pltpu.CompilerParams(
            dimension_semantics=("parallel", "arbitrary"),
            vmem_limit_bytes=_VMEM_LIMIT),
    )(p, yf)

    # Single tiny cross-lane reduce, fused by XLA with the scalar epilogue below.
    sums = jnp.sum(partials, axis=(0, 2, 3))  # (4,)
    return sums, n


def rmse_module_forward(pred, y):
    """JAX/Pallas equivalent of RMSE.forward(pred, y)."""
    sums, n = _reduce_sums(pred, y)
    sq_sum, sl1_sum, y_sum, ysq_sum = sums[0], sums[1], sums[2], sums[3]
    nf = jnp.float32(n)

    rmse_loss = jnp.sqrt(sq_sum / nf)          # sqrt(mean((pred-y)^2))
    mse_loss = sl1_sum / nf                    # SmoothL1Loss (mean, beta=1)
    # TODO(synk): single-pass ss_tot = sum(y^2) - sum(y)^2/n can cancel for large,
    # offset y; use a shifted/two-pass form if high-precision r2 is required.
    ss_tot = ysq_sum - (y_sum * y_sum) / nf    # sum((y - mean(y))^2)
    r2_loss = 1.0 - sq_sum / ss_tot            # 1 - SS_res / SS_tot (no guard, as in ref)

    return {"rmse": rmse_loss, "r2": r2_loss, "mse": mse_loss}


def _reference(pred, y):
    pred = pred.astype(jnp.float32).reshape(-1)
    y = y.astype(jnp.float32).reshape(-1)
    d = pred - y
    rmse_loss = jnp.sqrt(jnp.mean(d * d))
    ad = jnp.abs(d)
    mse_loss = jnp.mean(jnp.where(ad < 1.0, 0.5 * d * d, ad - 0.5))
    r2_loss = 1.0 - jnp.sum(d * d) / jnp.sum(jnp.square(y - jnp.mean(y)))
    return {"rmse": rmse_loss, "r2": r2_loss, "mse": mse_loss}


if __name__ == "__main__":
    key = jax.random.PRNGKey(0)
    k1, k2 = jax.random.split(key)
    # NCHW-shaped inputs (the module is shape-agnostic; losses reduce over all elems)
    pred = jax.random.normal(k1, (2, 4, 16, 16), dtype=jnp.float32)
    y = jax.random.normal(k2, (2, 4, 16, 16), dtype=jnp.float32)

    out = rmse_module_forward(pred, y)
    out = jax.tree_util.tree_map(jax.block_until_ready, out)

    ref = _reference(pred, y)
    for name in ("rmse", "r2", "mse"):
        assert jnp.allclose(out[name], ref[name], rtol=1e-5, atol=1e-5), (
            name, out[name], ref[name])

    print("KERNEL_OK")
</pallas_src>

<mosaic_0001>
module attributes {stable_mosaic.version = 11 : i64} {
  func.func @kernel(%arg0: i32, %arg1: i32, %arg2: memref<16x128xf32, #tpu.memory_space<vmem>>, %arg3: memref<16x128xf32, #tpu.memory_space<vmem>>, %arg4: memref<1x4x8x128xf32, #tpu.memory_space<vmem>>) attributes {dimension_semantics = [#tpu.dimension_semantics<parallel>, #tpu.dimension_semantics<arbitrary>], iteration_bounds = array<i64: 1, 1>, scalar_prefetch = 0 : i64, scratch_operands = 0 : i64, tpu.core_type = #tpu.core_type<tc>, window_params = [{transform_indices = @transform_0, window_bounds = array<i64: 16, 128>}, {transform_indices = @transform_1, window_bounds = array<i64: 16, 128>}, {transform_indices = @transform_2, window_bounds = array<i64: 1, 4, 8, 128>}]} {
    %c0_i32 = arith.constant 0 : i32
    %0 = arith.cmpi eq, %arg1, %c0_i32 : i32
    %1 = arith.extui %0 : i1 to i32
    %c0_i32_0 = arith.constant 0 : i32
    %2 = arith.cmpi ne, %1, %c0_i32_0 : i32
    scf.if %2 {
      %cst_39 = arith.constant 0.000000e+00 : f32
      %57 = vector.broadcast %cst_39 : f32 to vector<4x8x128xf32>
      %c0_40 = arith.constant 0 : index
      %c0_41 = arith.constant 0 : index
      %c0_42 = arith.constant 0 : index
      %c0_43 = arith.constant 0 : index
      %58 = vector.load %arg4[%c0_40, %c0_41, %c0_42, %c0_43] : memref<1x4x8x128xf32, #tpu.memory_space<vmem>>, vector<1x4x8x128xf32>
      %59 = vector.shape_cast %58 : vector<1x4x8x128xf32> to vector<4x8x128xf32>
      %60 = vector.shape_cast %57 : vector<4x8x128xf32> to vector<1x4x8x128xf32>
      tpu.vector_store %arg4[%c0_40, %c0_41, %c0_42, %c0_43], %60 {strides = array<i32>} : memref<1x4x8x128xf32, #tpu.memory_space<vmem>>, vector<1x4x8x128xf32>,
    } else {
    }
    %cst = arith.constant 0.000000e+00 : f32
    %3 = vector.broadcast %cst : f32 to vector<8x128xf32>
    %c0_i32_1 = arith.constant 0 : i32
    %c16_i32 = arith.constant 16 : i32
    %4 = arith.muli %c0_i32_1, %c16_i32 : i32
    %5 = tpu.assume_multiple %4, 16 : i32
    %6 = arith.index_cast %5 : i32 to index
    %c0 = arith.constant 0 : index
    %7 = vector.load %arg2[%6, %c0] : memref<16x128xf32, #tpu.memory_space<vmem>>, vector<16x128xf32>
    %8 = arith.index_cast %5 : i32 to index
    %c0_2 = arith.constant 0 : index
    %9 = vector.load %arg3[%8, %c0_2] : memref<16x128xf32, #tpu.memory_space<vmem>>, vector<16x128xf32>
    %10 = arith.subf %7, %9 : vector<16x128xf32>
    %11 = arith.mulf %10, %10 : vector<16x128xf32>
    %12 = math.absf %10 : vector<16x128xf32>
    %cst_3 = arith.constant 1.000000e+00 : f32
    %13 = vector.broadcast %cst_3 : f32 to vector<16x128xf32>
    %14 = arith.cmpf olt, %12, %13 : vector<16x128xf32>
    %cst_4 = arith.constant 5.000000e-01 : f32
    %15 = vector.broadcast %cst_4 : f32 to vector<16x128xf32>
    %16 = arith.mulf %15, %11 : vector<16x128xf32>
    %cst_5 = arith.constant 5.000000e-01 : f32
    %17 = vector.broadcast %cst_5 : f32 to vector<16x128xf32>
    %18 = arith.subf %12, %17 : vector<16x128xf32>
    %19 = arith.select %14, %16, %18 : vector<16x128xi1>, vector<16x128xf32>
    %20 = arith.mulf %9, %9 : vector<16x128xf32>
    %21 = vector.shape_cast %11 : vector<16x128xf32> to vector<2x8x128xf32>
    %cst_6 = arith.constant dense<0.000000e+00> : vector<8x128xf32>
    %22 = vector.multi_reduction <add>, %21, %cst_6 [0] : vector<2x8x128xf32> to vector<8x128xf32>
    %23 = vector.shape_cast %19 : vector<16x128xf32> to vector<2x8x128xf32>
    %cst_7 = arith.constant dense<0.000000e+00> : vector<8x128xf32>
    %24 = vector.multi_reduction <add>, %23, %cst_7 [0] : vector<2x8x128xf32> to vector<8x128xf32>
    %25 = vector.shape_cast %9 : vector<16x128xf32> to vector<2x8x128xf32>
    %cst_8 = arith.constant dense<0.000000e+00> : vector<8x128xf32>
    %26 = vector.multi_reduction <add>, %25, %cst_8 [0] : vector<2x8x128xf32> to vector<8x128xf32>
    %27 = vector.shape_cast %20 : vector<16x128xf32> to vector<2x8x128xf32>
    %cst_9 = arith.constant dense<0.000000e+00> : vector<8x128xf32>
    %28 = vector.multi_reduction <add>, %27, %cst_9 [0] : vector<2x8x128xf32> to vector<8x128xf32>
    %29 = arith.addf %3, %22 : vector<8x128xf32>
    %30 = arith.addf %3, %24 : vector<8x128xf32>
    %31 = arith.addf %3, %26 : vector<8x128xf32>
    %32 = arith.addf %3, %28 : vector<8x128xf32>
    %c1_i32 = arith.constant 1 : i32
    %c0_10 = arith.constant 0 : index
    %c0_11 = arith.constant 0 : index
    %c0_12 = arith.constant 0 : index
    %c0_13 = arith.constant 0 : index
    %33 = vector.load %arg4[%c0_10, %c0_11, %c0_12, %c0_13] : memref<1x4x8x128xf32, #tpu.memory_space<vmem>>, vector<1x1x8x128xf32>
    %34 = vector.shape_cast %33 : vector<1x1x8x128xf32> to vector<8x128xf32>
    %35 = arith.addf %34, %29 : vector<8x128xf32>
    %c0_14 = arith.constant 0 : index
    %c0_15 = arith.constant 0 : index
    %c0_16 = arith.constant 0 : index
    %c0_17 = arith.constant 0 : index
    %36 = vector.load %arg4[%c0_14, %c0_15, %c0_16, %c0_17] : memref<1x4x8x128xf32, #tpu.memory_space<vmem>>, vector<1x1x8x128xf32>
    %37 = vector.shape_cast %36 : vector<1x1x8x128xf32> to vector<8x128xf32>
    %38 = vector.shape_cast %35 : vector<8x128xf32> to vector<1x1x8x128xf32>
    tpu.vector_store %arg4[%c0_14, %c0_15, %c0_16, %c0_17], %38 {strides = array<i32>} : memref<1x4x8x128xf32, #tpu.memory_space<vmem>>, vector<1x1x8x128xf32>,
    %c0_18 = arith.constant 0 : index
    %c1 = arith.constant 1 : index
    %c0_19 = arith.constant 0 : index
    %c0_20 = arith.constant 0 : index
    %39 = vector.load %arg4[%c0_18, %c1, %c0_19, %c0_20] : memref<1x4x8x128xf32, #tpu.memory_space<vmem>>, vector<1x1x8x128xf32>
    %40 = vector.shape_cast %39 : vector<1x1x8x128xf32> to vector<8x128xf32>
    %41 = arith.addf %40, %30 : vector<8x128xf32>
    %c0_21 = arith.constant 0 : index
    %c1_22 = arith.constant 1 : index
    %c0_23 = arith.constant 0 : index
    %c0_24 = arith.constant 0 : index
    %42 = vector.load %arg4[%c0_21, %c1_22, %c0_23, %c0_24] : memref<1x4x8x128xf32, #tpu.memory_space<vmem>>, vector<1x1x8x128xf32>
    %43 = vector.shape_cast %42 : vector<1x1x8x128xf32> to vector<8x128xf32>
    %44 = vector.shape_cast %41 : vector<8x128xf32> to vector<1x1x8x128xf32>
    tpu.vector_store %arg4[%c0_21, %c1_22, %c0_23, %c0_24], %44 {strides = array<i32>} : memref<1x4x8x128xf32, #tpu.memory_space<vmem>>, vector<1x1x8x128xf32>,
    %c0_25 = arith.constant 0 : index
    %c2 = arith.constant 2 : index
    %c0_26 = arith.constant 0 : index
    %c0_27 = arith.constant 0 : index
    %45 = vector.load %arg4[%c0_25, %c2, %c0_26, %c0_27] : memref<1x4x8x128xf32, #tpu.memory_space<vmem>>, vector<1x1x8x128xf32>
    %46 = vector.shape_cast %45 : vector<1x1x8x128xf32> to vector<8x128xf32>
    %47 = arith.addf %46, %31 : vector<8x128xf32>
    %c0_28 = arith.constant 0 : index
    %c2_29 = arith.constant 2 : index
    %c0_30 = arith.constant 0 : index
    %c0_31 = arith.constant 0 : index
    %48 = vector.load %arg4[%c0_28, %c2_29, %c0_30, %c0_31] : memref<1x4x8x128xf32, #tpu.memory_space<vmem>>, vector<1x1x8x128xf32>
    %49 = vector.shape_cast %48 : vector<1x1x8x128xf32> to vector<8x128xf32>
    %50 = vector.shape_cast %47 : vector<8x128xf32> to vector<1x1x8x128xf32>
    tpu.vector_store %arg4[%c0_28, %c2_29, %c0_30, %c0_31], %50 {strides = array<i32>} : memref<1x4x8x128xf32, #tpu.memory_space<vmem>>, vector<1x1x8x128xf32>,
    %c0_32 = arith.constant 0 : index
    %c3 = arith.constant 3 : index
    %c0_33 = arith.constant 0 : index
    %c0_34 = arith.constant 0 : index
    %51 = vector.load %arg4[%c0_32, %c3, %c0_33, %c0_34] : memref<1x4x8x128xf32, #tpu.memory_space<vmem>>, vector<1x1x8x128xf32>
    %52 = vector.shape_cast %51 : vector<1x1x8x128xf32> to vector<8x128xf32>
    %53 = arith.addf %52, %32 : vector<8x128xf32>
    %c0_35 = arith.constant 0 : index
    %c3_36 = arith.constant 3 : index
    %c0_37 = arith.constant 0 : index
    %c0_38 = arith.constant 0 : index
    %54 = vector.load %arg4[%c0_35, %c3_36, %c0_37, %c0_38] : memref<1x4x8x128xf32, #tpu.memory_space<vmem>>, vector<1x1x8x128xf32>
    %55 = vector.shape_cast %54 : vector<1x1x8x128xf32> to vector<8x128xf32>
    %56 = vector.shape_cast %53 : vector<8x128xf32> to vector<1x1x8x128xf32>
    tpu.vector_store %arg4[%c0_35, %c3_36, %c0_37, %c0_38], %56 {strides = array<i32>} : memref<1x4x8x128xf32, #tpu.memory_space<vmem>>, vector<1x1x8x128xf32>,
    return
  }
  func.func @transform_0(%arg0: i32, %arg1: i32) -> (i32, i32) {
    %c1_i32 = arith.constant 1 : i32
    %0 = arith.muli %arg0, %c1_i32 : i32
    %1 = arith.addi %0, %arg1 : i32
    %c0_i32 = arith.constant 0 : i32
    %2 = arith.minsi %1, %c0_i32 : i32
    %c0_i32_0 = arith.constant 0 : i32
    %c0_i32_1 = arith.constant 0 : i32
    return %2, %c0_i32_0 : i32, i32
  }
  func.func @transform_1(%arg0: i32, %arg1: i32) -> (i32, i32) {
    %c1_i32 = arith.constant 1 : i32
    %0 = arith.muli %arg0, %c1_i32 : i32
    %1 = arith.addi %0, %arg1 : i32
    %c0_i32 = arith.constant 0 : i32
    %2 = arith.minsi %1, %c0_i32 : i32
    %c0_i32_0 = arith.constant 0 : i32
    %c0_i32_1 = arith.constant 0 : i32
    return %2, %c0_i32_0 : i32, i32
  }
  func.func @transform_2(%arg0: i32, %arg1: i32) -> (i32, i32, i32, i32) {
    %c0_i32 = arith.constant 0 : i32
    %c0_i32_0 = arith.constant 0 : i32
    %c0_i32_1 = arith.constant 0 : i32
    %c0_i32_2 = arith.constant 0 : i32
    return %arg0, %c0_i32, %c0_i32_0, %c0_i32_1 : i32, i32, i32, i32
  }
}

</mosaic_0001>

<bundles_post_ra>
// kernel: tpu_custom_call.1
= control target key start
LH: loop header
LB: loop body
LE: loop exit
PB: predicated region body
PF: predicated region fallthrough
CT: control target
= control target key end

     0   :  { %7 = vsyncpa [#allocation3], 0  ;;  %s278_s0 = inlined_call_operand.hbm [shape: f32[16,128], index: 0, kind: input, shape index: {}]   ;;  %s279_s1 = inlined_call_operand.hbm [shape: f32[16,128], index: 1, kind: input, shape index: {}]   ;;  %s280_s2 = inlined_call_operand.hbm [shape: f32[1,4,8,128], index: 2, kind: output, shape index: {}]  }
   0x1   :  { %8 = vsyncpa [#allocation6], 0 }
   0x2   :  { %9 = vsyncpa [#allocation4], 0  ;;  %s213_s9 = smov [#allocation2]   ;;  %s141_s13 = scalar_lea.hbm %s278_s0, 256 }
   0x3   :  { %s21_s10 = sshll.u32 %s213_s9, 4  ;;  %p142_p0 = scmp.ne.s32.totalorder %s278_s0, %s141_s13  ;;  %s22_s10 = int_to_ptr.vmem [resolvable:$true] %s21_s10 }
   0x4   :  { %p145_p1 = scmp.lt.u32.totalorder %s141_s13, %s278_s0 }
   0x6   :  { %p147_p2 = pnand %p145_p1, %p142_p0 }
   0x8   :  { %150 = shalt.err (!%p147_p2)
}
   0x9   :  { %s151_s18 = scalar_lea.vmem %s22_s10, 256  ;;  %p156_p4 = scmp.lt.s32.totalorder %s22_s10, %s22_s10 }
   0xa   :  { %p152_p3 = scmp.ne.s32.totalorder %s22_s10, %s151_s18  ;;  %p157_p5 = scmp.lt.s32.totalorder %s151_s18, %s151_s18 }
   0xc   :  { %p158_p6 = por %p157_p5, %p156_p4 }
   0xe   :  { %p159_p7 = pnand %p158_p6, %p152_p3 }
  0x10   :  { %162 = shalt.err (!%p159_p7)
}
  0x11   :  { %s214_s19 = smov 128   ;;  %s215_s20 = smov 8  }
  0x12   :  { %27 = dma.hbm_to_vmem [thread:$0]  %s278_s0, 256, %s22_s10, [#allocation3], %s214_s19, %s214_s19, %s215_s20  }
  0x13   :  { %s216_s23 = smov [#allocation5]   ;;  %s163_s27 = scalar_lea.hbm %s279_s1, 256 }
  0x14   :  { %s39_s24 = sshll.u32 %s216_s23, 4  ;;  %p164_p8 = scmp.ne.s32.totalorder %s279_s1, %s163_s27  ;;  %s40_s24 = int_to_ptr.vmem [resolvable:$true] %s39_s24 }
  0x15   :  { %p167_p9 = scmp.lt.u32.totalorder %s163_s27, %s279_s1 }
  0x17   :  { %p169_p10 = pnand %p167_p9, %p164_p8 }
  0x19   :  { %172 = shalt.err (!%p169_p10)
}
  0x1a   :  { %s173_s4 = scalar_lea.vmem %s40_s24, 256  ;;  %p178_p12 = scmp.lt.s32.totalorder %s40_s24, %s40_s24 }
  0x1b   :  { %p174_p11 = scmp.ne.s32.totalorder %s40_s24, %s173_s4  ;;  %p179_p13 = scmp.lt.s32.totalorder %s173_s4, %s173_s4 }
  0x1d   :  { %p180_p0 = por %p179_p13, %p178_p12 }
  0x1f   :  { %p181_p1 = pnand %p180_p0, %p174_p11 }
  0x21   :  { %184 = shalt.err (!%p181_p1)
}
  0x22   :  { %45 = dma.hbm_to_vmem [thread:$0]  %s279_s1, 256, %s40_s24, [#allocation6], %s214_s19, %s214_s19, %s215_s20  }
  0x23   :  { %207 = dma.done.wait [#allocation3], 256  }
  0x24   :  { %208 = vsyncadd [#allocation3], 4294967040 }
  0x25   :  { %209 = dma.done.wait [#allocation6], 256  }
  0x26   :  { %210 = vsyncadd [#allocation6], 4294967040  ;;  %v68_v0 = vld [vmem:[#allocation2] sm:$0xff]  ;;  %v69_v1 = vld [vmem:[#allocation2 + $0x8] sm:$0xff]  ;;  %s217_s1 = smov [#allocation7]  }
  0x27   :  { %v70_v2 = vld [vmem:[#allocation5] sm:$0xff]  ;;  %v71_v3 = vld [vmem:[#allocation5 + $0x8] sm:$0xff]  ;;  %s116_s6 = sshll.u32 %s217_s1, 4  ;;  %s117_s6 = int_to_ptr.vmem [resolvable:$true] %s116_s6 }
  0x28   :  { %v72_v4 = vsub.f32 %v68_v0, %v70_v2  ;;  %v86_v5 = vmul.f32 %v70_v2, %v70_v2  ;;  %v73_v6 = vsub.f32 %v69_v1, %v71_v3  ;;  %v90_v7 = vadd.f32 %v71_v3, %v70_v2  ;;  %s185_s7 = scalar_lea.vmem %s117_s6, 512  ;;  %p190_p3 = scmp.lt.s32.totalorder %s117_s6, %s117_s6 }
  0x29   :  { %v87_v8 = vmul.f32 %v71_v3, %v71_v3  ;;  %p186_p2 = scmp.ne.s32.totalorder %s117_s6, %s185_s7  ;;  %p191_p4 = scmp.lt.s32.totalorder %s185_s7, %s185_s7 }
  0x2a   :  { %v74_v9 = vmul.f32 %v72_v4, %v72_v4  ;;  %v76_v10 = vand.u32 2147483647, %v72_v4  ;;  %v75_v11 = vmul.f32 %v73_v6, %v73_v6  ;;  %v77_v12 = vand.u32 2147483647, %v73_v6  ;;  %106 = vst [vmem:[#allocation7 + $0x10] sm:$0xff] %v90_v7 }
  0x2b   :  { %v91_v13 = vadd.f32 %v87_v8, %v86_v5  ;;  %p192_p5 = por %p191_p4, %p190_p3 }
  0x2c   :  { %v80_v14 = vmul.f32 0.5, %v74_v9  ;;  %vm78_vm0 = vcmp.lt.f32.partialorder %v76_v10, 1.0  ;;  %v133_v15 = vadd.f32 -0.5, %v76_v10  ;;  %v81_v16 = vmul.f32 0.5, %v75_v11 }
  0x2d   :  { %v88_v17 = vadd.f32 %v75_v11, %v74_v9  ;;  %vm79_vm1 = vcmp.lt.f32.partialorder %v77_v12, 1.0  ;;  %v134_v18 = vadd.f32 -0.5, %v77_v12  ;;  %110 = vst [vmem:[#allocation7 + $0x18] sm:$0xff] %v91_v13  ;;  %p193_p6 = pnand %p192_p5, %p186_p2 }
  0x2e   :  { %v84_v19 = vsel %vm78_vm0, %v80_v14, %v133_v15 }
  0x2f   :  { %v85_v20 = vsel %vm79_vm1, %v81_v16, %v134_v18  ;;  %98 = vst [vmem:[#allocation7] sm:$0xff] %v88_v17 }
  0x30   :  { %v89_v21 = vadd.f32 %v85_v20, %v84_v19 }
  0x32   :  { %102 = vst [vmem:[#allocation7 + $0x8] sm:$0xff] %v89_v21 }
  0x33   :  { %196 = shalt.err (!%p193_p6)
}
  0x34   :  { %s197_s10 = scalar_lea.hbm %s280_s2, 512 }
  0x35   :  { %p198_p7 = scmp.ne.s32.totalorder %s280_s2, %s197_s10  ;;  %p201_p8 = scmp.lt.u32.totalorder %s197_s10, %s280_s2 }
  0x37   :  { %p203_p9 = pnand %p201_p8, %p198_p7 }
  0x39   :  { %206 = shalt.err (!%p203_p9)
}
  0x3a   :  { %122 = dma.vmem_to_hbm [thread:$0]  %s117_s6, 512, %s280_s2, [#allocation4], %s214_s19, %s214_s19, %s215_s20  }
  0x3b   :  { %211 = dma.done.wait [#allocation4], 512  }
  0x3c   :  { %212 = vsyncadd [#allocation4], 4294966784 }
  0x3d   :  { %126 = vsyncpa [#allocation3], 1 }
  0x3e   :  { %127 = vsyncpa [#allocation6], 1 }
  0x3f   :  { %128 = vsyncpa [#allocation4], 1 }

</bundles_post_ra>
